<compile_context>
chip_gen: v6e
topology: v6e:2x2x1
jax: 0.10.0
libtpu: 0.0.40
codegen_flags: <defaults>
</compile_context>

<pallas_src>
import jax
import jax.numpy as jnp
from jax.experimental import pallas as pl
from jax.experimental.pallas import tpu as pltpu


# ----------------------------- helpers --------------------------------------

def _round_up(x, m):
    return ((x + m - 1) // m) * m


def _divisors(n):
    ds = set()
    i = 1
    while i * i <= n:
        if n % i == 0:
            ds.add(i)
            ds.add(n // i)
        i += 1
    return sorted(ds)


def _sublane(itemsize):
    # rows per sublane tile: f32 -> 8, bf16 -> 16, int8/fp8 -> 32
    return 8 * (4 // itemsize)


def _vmem_budget_bytes():
    """Generation-aware scoped-VMEM budget.
    v7x: 64 MiB physical -> 32 MiB budget; v5e/v6e: 128 MiB -> 48 MiB budget.
    Conservative fallback (unknown chip) = v7x numbers."""
    phys = 64 << 20
    try:
        info = pltpu.get_tpu_info()
        for attr in ("vmem_capacity_bytes", "vmem_bytes", "vmem_size_bytes"):
            v = getattr(info, attr, None)
            if v:
                phys = int(v)
                break
    except Exception:
        pass
    return min(phys // 2, 48 << 20)


# ----------------------------- kernels --------------------------------------

def _patch_proj_fold_kernel(x_ref, w_ref, b_ref, o_ref):
    # x_ref: (t_r, Kfold)  w_ref: (Kfold, Npad)  b_ref: (1, Npad)  o_ref: (t_r, Npad)
    # Single MXU matmul: dh/dw/Cin all folded into the contraction dim.
    acc = jnp.dot(x_ref[...], w_ref[...], preferred_element_type=jnp.float32)
    o_ref[...] = (acc + b_ref[...].astype(jnp.float32)).astype(o_ref.dtype)


def _patch_proj_dh_kernel(x_ref, w_ref, b_ref, o_ref, acc_ref):
    # x_ref: (t_m, p, Wo, K2)  w_ref: (p, K2, Npad)  b_ref: (1, Npad)
    # o_ref: (t_m*Wo, Npad)    acc_ref: f32 VMEM scratch (t_m*Wo, Npad)
    t_m, p, wo, k2 = x_ref.shape
    mt = t_m * wo
    xv = x_ref[...]
    acc_ref[...] = jnp.dot(xv[:, 0].reshape(mt, k2), w_ref[0],
                           preferred_element_type=jnp.float32)
    for dh in range(1, p):  # p is small (2 or 4): static unroll
        acc_ref[...] += jnp.dot(xv[:, dh].reshape(mt, k2), w_ref[dh],
                                preferred_element_type=jnp.float32)
    o_ref[...] = (acc_ref[...] + b_ref[...].astype(jnp.float32)).astype(o_ref.dtype)


# --------------------------- tile choosers -----------------------------------

def _pick_rows_fold(M, Kfold, Npad, itemsize, cap, target_rows=1024):
    """Row-tile for the folded (2D) path, using padded-VMEM bytes."""
    sub = _sublane(itemsize)
    kpad = _round_up(Kfold, 128)

    def working_set(rows):
        rpad = _round_up(rows, sub)
        x_t = rpad * kpad * itemsize
        o_t = rpad * Npad * itemsize
        w_t = _round_up(Kfold, sub) * Npad * itemsize
        b_t = sub * Npad * itemsize
        return 2 * (x_t + o_t + w_t + b_t)   # 2x = default double buffering

    cands = _divisors(M)
    legal = [d for d in cands
             if (d % sub == 0 or d == M) and d <= target_rows
             and working_set(d) <= cap]
    multi = [d for d in legal if d < M]      # keep >= 2 grid steps (2 TCs on v7x)
    if multi:
        return max(multi)
    if legal:
        return max(legal)
    fb = [d for d in cands if d % sub == 0] or [M]
    return fb[0]


def _pick_tm_dh(BHo, Wo, p, K2, Npad, itemsize, cap, target_rows=1024):
    """t_m (output-row-of-patches tile) for the per-dh (4D) path."""
    sub = _sublane(itemsize)
    kpad = _round_up(K2, 128)
    wopad = _round_up(Wo, sub)

    def working_set(t_m):
        rows = t_m * Wo
        rpad = _round_up(rows, sub)
        x_t = t_m * p * wopad * kpad * itemsize
        o_t = rpad * Npad * itemsize
        acc = rpad * Npad * 4                # f32 scratch (single-buffered)
        w_t = p * _round_up(K2, sub) * Npad * itemsize
        b_t = sub * Npad * itemsize
        return 2 * (x_t + o_t + w_t + b_t) + acc

    cands = _divisors(BHo)
    legal = [d for d in cands
             if ((d * Wo) % sub == 0 or d == BHo)
             and d * Wo <= target_rows and working_set(d) <= cap]
    multi = [d for d in legal if d < BHo]
    if multi:
        return max(multi)
    if legal:
        return max(legal)
    fb = [d for d in cands if (d * Wo) % sub == 0] or [BHo]
    return fb[0]


# ------------------------------ wrapper --------------------------------------

def downsample_pallas(x, weight, bias, patch_size):
    """x: (B, H, W, Cin) channels-last.
    weight: (Cout, Cin, p, p)  -- PyTorch Conv2d.weight layout
    bias:   (Cout,)
    Returns (B, H//p, W//p, Cout)."""
    B, H, W, Cin = x.shape
    Cout = weight.shape[0]
    p = patch_size
    assert H % p == 0 and W % p == 0
    Ho, Wo = H // p, W // p
    BHo = B * Ho
    M = BHo * Wo
    K2 = p * Cin
    Npad = _round_up(Cout, 128)              # lane-dense output channels
    itemsize = x.dtype.itemsize

    budget = _vmem_budget_bytes()
    cap = max(budget - (4 << 20), 4 << 20)   # headroom for internal scratch

    b2 = bias.reshape(1, Cout).astype(x.dtype)
    if Npad != Cout:
        b2 = jnp.pad(b2, ((0, 0), (0, Npad - Cout)))

    flops = 2 * M * (p * p * Cin) * Cout
    compiler_params = pltpu.CompilerParams(
        dimension_semantics=("parallel",),
        vmem_limit_bytes=budget,
    )

    if K2 < 128:
        # ---- folded-contraction path (small Cin) --------------------------
        Kfold = p * p * Cin
        x2 = (x.reshape(B, Ho, p, Wo, p, Cin)
                .transpose(0, 1, 3, 2, 4, 5)
                .reshape(M, Kfold))
        w2 = weight.transpose(2, 3, 1, 0).reshape(Kfold, Cout).astype(x.dtype)
        if Npad != Cout:
            w2 = jnp.pad(w2, ((0, 0), (0, Npad - Cout)))

        t_r = _pick_rows_fold(M, Kfold, Npad, itemsize, cap)
        grid = (M // t_r,)
        bytes_accessed = (M * Kfold + Kfold * Npad + Npad + M * Npad) * itemsize

        out_flat = pl.pallas_call(
            _patch_proj_fold_kernel,
            out_shape=jax.ShapeDtypeStruct((M, Npad), x.dtype),
            grid_spec=pltpu.PrefetchScalarGridSpec(
                num_scalar_prefetch=0,
                grid=grid,
                in_specs=[
                    pl.BlockSpec((t_r, Kfold), lambda i: (i, 0)),
                    # weight / bias: constant index_map -> fetched once, resident
                    pl.BlockSpec((Kfold, Npad), lambda i: (0, 0)),
                    pl.BlockSpec((1, Npad), lambda i: (0, 0)),
                ],
                out_specs=pl.BlockSpec((t_r, Npad), lambda i: (i, 0)),
            ),
            compiler_params=compiler_params,
            cost_estimate=pl.CostEstimate(
                flops=flops, transcendentals=0, bytes_accessed=bytes_accessed),
        )(x2, w2, b2)
    else:
        # ---- per-dh accumulate path (K2 >= 128, free NHWC reshape) --------
        x4 = x.reshape(BHo, p, Wo, K2)
        w3 = weight.transpose(2, 3, 1, 0).reshape(p, K2, Cout).astype(x.dtype)
        if Npad != Cout:
            w3 = jnp.pad(w3, ((0, 0), (0, 0), (0, Npad - Cout)))

        t_m = _pick_tm_dh(BHo, Wo, p, K2, Npad, itemsize, cap)
        grid = (BHo // t_m,)
        rows = t_m * Wo
        bytes_accessed = (M * p * K2 + p * K2 * Npad + Npad + M * Npad) * itemsize

        out_flat = pl.pallas_call(
            _patch_proj_dh_kernel,
            out_shape=jax.ShapeDtypeStruct((M, Npad), x.dtype),
            grid_spec=pltpu.PrefetchScalarGridSpec(
                num_scalar_prefetch=0,
                grid=grid,
                in_specs=[
                    pl.BlockSpec((t_m, p, Wo, K2), lambda i: (i, 0, 0, 0)),
                    pl.BlockSpec((p, K2, Npad), lambda i: (0, 0, 0)),
                    pl.BlockSpec((1, Npad), lambda i: (0, 0)),
                ],
                out_specs=pl.BlockSpec((rows, Npad), lambda i: (i, 0)),
                scratch_shapes=[pltpu.VMEM((rows, Npad), jnp.float32)],
            ),
            compiler_params=compiler_params,
            cost_estimate=pl.CostEstimate(
                flops=flops, transcendentals=0, bytes_accessed=bytes_accessed),
        )(x4, w3, b2)

    if Npad != Cout:
        out_flat = out_flat[:, :Cout]
    return out_flat.reshape(B, Ho, Wo, Cout)


# ------------------------------- demo ----------------------------------------

def _reference(x, weight, bias, patch_size):
    return jax.lax.conv_general_dilated(
        x, weight.transpose(2, 3, 1, 0),        # (kh, kw, Cin, Cout)
        window_strides=(patch_size, patch_size),
        padding="VALID",
        dimension_numbers=("NHWC", "HWIO", "NHWC"),
    ) + bias


if __name__ == "__main__":
    key = jax.random.PRNGKey(0)
    fn = jax.jit(downsample_pallas, static_argnames="patch_size")

    # --- Test 1: small-Cin (folded contraction) path, Cout padded to 128 ----
    B, H, W = 2, 16, 16
    in_dim, out_dim, patch = 4, 8, 2
    k1, k2, k3, key = jax.random.split(key, 4)
    x = jax.random.normal(k1, (B, H, W, in_dim), dtype=jnp.float32)
    w = jax.random.normal(k2, (out_dim, in_dim, patch, patch),
                          dtype=jnp.float32) * 0.1
    b = jax.random.normal(k3, (out_dim,), dtype=jnp.float32) * 0.1
    out = jax.block_until_ready(fn(x, w, b, patch_size=patch))
    ref = _reference(x, w, b, patch)
    assert out.shape == (B, H // patch, W // patch, out_dim)
    assert jnp.allclose(out, ref, atol=1e-5, rtol=1e-5)

    # --- Test 2: large-Cin (per-dh scratch accumulate) path, lane-dense Cout -
    in_dim, out_dim, patch = 64, 128, 2
    k1, k2, k3, key = jax.random.split(key, 4)
    x = jax.random.normal(k1, (B, H, W, in_dim), dtype=jnp.float32)
    w = jax.random.normal(k2, (out_dim, in_dim, patch, patch),
                          dtype=jnp.float32) * 0.05
    b = jax.random.normal(k3, (out_dim,), dtype=jnp.float32) * 0.1
    out = jax.block_until_ready(fn(x, w, b, patch_size=patch))
    ref = _reference(x, w, b, patch)
    assert out.shape == (B, H // patch, W // patch, out_dim)
    assert jnp.allclose(out, ref, atol=1e-4, rtol=1e-4)

    print("KERNEL_OK")
</pallas_src>

<mosaic_0001>
module attributes {stable_mosaic.version = 11 : i64} {
  func.func @_patch_proj_fold_kernel(%arg0: i32, %arg1: memref<64x16xf32, #tpu.memory_space<vmem>>, %arg2: memref<16x128xf32, #tpu.memory_space<vmem>>, %arg3: memref<1x128xf32, #tpu.memory_space<vmem>>, %arg4: memref<64x128xf32, #tpu.memory_space<vmem>>) attributes {dimension_semantics = [#tpu.dimension_semantics<parallel>], iteration_bounds = array<i64: 2>, scalar_prefetch = 0 : i64, scratch_operands = 0 : i64, tpu.core_type = #tpu.core_type<tc>, window_params = [{transform_indices = @transform_0, window_bounds = array<i64: 64, 16>}, {pipeline_mode = #tpu.pipeline_mode<synchronous>, transform_indices = @transform_1, window_bounds = array<i64: 16, 128>}, {pipeline_mode = #tpu.pipeline_mode<synchronous>, transform_indices = @transform_2, window_bounds = array<i64: 1, 128>}, {transform_indices = @transform_3, window_bounds = array<i64: 64, 128>}]} {
    %c0 = arith.constant 0 : index
    %c0_0 = arith.constant 0 : index
    %0 = vector.load %arg1[%c0, %c0_0] : memref<64x16xf32, #tpu.memory_space<vmem>>, vector<64x16xf32>
    %c0_1 = arith.constant 0 : index
    %c0_2 = arith.constant 0 : index
    %1 = vector.load %arg2[%c0_1, %c0_2] : memref<16x128xf32, #tpu.memory_space<vmem>>, vector<16x128xf32>
    %cst = arith.constant dense<0.000000e+00> : vector<64x128xf32>
    %2 = tpu.matmul %0, %1, %cst {dimension_numbers = #tpu.dot_dimension_numbers<[1], [0], [0], [1], [0, 0, 1, 1], [], []>} : vector<64x16xf32>, vector<16x128xf32>, vector<64x128xf32> -> vector<64x128xf32>
    %c0_3 = arith.constant 0 : index
    %c0_4 = arith.constant 0 : index
    %3 = vector.load %arg3[%c0_3, %c0_4] : memref<1x128xf32, #tpu.memory_space<vmem>>, vector<1x128xf32>
    %4 = vector.broadcast %3 : vector<1x128xf32> to vector<64x128xf32>
    %5 = arith.addf %2, %4 : vector<64x128xf32>
    %c0_5 = arith.constant 0 : index
    %c0_6 = arith.constant 0 : index
    %6 = vector.load %arg4[%c0_5, %c0_6] : memref<64x128xf32, #tpu.memory_space<vmem>>, vector<64x128xf32>
    tpu.vector_store %arg4[%c0_5, %c0_6], %5 {strides = array<i32>} : memref<64x128xf32, #tpu.memory_space<vmem>>, vector<64x128xf32>,
    return
  }
  func.func @transform_0(%arg0: i32) -> (i32, i32) {
    %c0_i32 = arith.constant 0 : i32
    %c0_i32_0 = arith.constant 0 : i32
    return %arg0, %c0_i32 : i32, i32
  }
  func.func @transform_1(%arg0: i32) -> (i32, i32) {
    %c0_i32 = arith.constant 0 : i32
    %c0_i32_0 = arith.constant 0 : i32
    %c0_i32_1 = arith.constant 0 : i32
    return %c0_i32, %c0_i32_0 : i32, i32
  }
  func.func @transform_2(%arg0: i32) -> (i32, i32) {
    %c0_i32 = arith.constant 0 : i32
    %c0_i32_0 = arith.constant 0 : i32
    %c0_i32_1 = arith.constant 0 : i32
    return %c0_i32, %c0_i32_0 : i32, i32
  }
  func.func @transform_3(%arg0: i32) -> (i32, i32) {
    %c0_i32 = arith.constant 0 : i32
    %c0_i32_0 = arith.constant 0 : i32
    return %arg0, %c0_i32 : i32, i32
  }
}

</mosaic_0001>

<bundles_post_ra>
// kernel: downsample_pallas.1
= control target key start
LH: loop header
LB: loop body
LE: loop exit
PB: predicated region body
PF: predicated region fallthrough
CT: control target
= control target key end

     0   :  { %8 = vsyncpa [#allocation3], 0  ;;  %s703_s0 = inlined_call_operand.vmem [shape: f32[128,16], index: 0, kind: input, shape index: {}]   ;;  %s704_s1 = inlined_call_operand.vmem [shape: f32[16,128], index: 1, kind: input, shape index: {}]   ;;  %s705_s2 = inlined_call_operand.vmem [shape: f32[1,128], index: 2, kind: input, shape index: {}]   ;;  %s706_s3 = inlined_call_operand.hbm [shape: f32[128,128], index: 3, kind: output, shape index: {}]  }
   0x1   :  { %10 = vsyncpa [#allocation3 + $0x1], 0  ;;  %s581_s12 = smov 0   ;;  %s583_s13 = smov 0  }
   0x2   :  { %s585_s14 = smov 0   ;;  %s587_s15 = smov 0  }
   0x3 LB: > { %s602_s16 = sadd.s32 4294967295, %s556_s15   ;;  %s403_s17 = sadd.s32 4294967294, %s556_s15   ;;  %s556_s15 = sphi %s587_s15, %s712_s15   ;;  %s552_s14 = sphi %s585_s14, %s711_s14   ;;  %s548_s13 = sphi %s583_s13, %s710_s13   ;;  %s544_s12 = sphi %s581_s12, %s709_s12  }
   0x4   : > { %s606_s18 = sadd.s32 1, %s556_s15   ;;  %s91_s19 = sadd.s32 1, %s552_s14 }
   0x5   : > { %s88_s20 = ssub.s32 %s556_s15, %s606_s18  ;;  %p101_p0 = scmp.ne.s32.totalorder %s552_s14, %s548_s13 }
   0x6   : > { %p89_p1 = scmp.eq.s32.totalorder %s88_s20, 0  ;;  %p102_p2 = scmp.eq.s32.totalorder %s602_s16, 1 }
   0x7   : > { %p107_p3 = scmp.ne.s32.totalorder %s548_s13, %s544_s12  ;;  %p108_p4 = scmp.eq.s32.totalorder %s403_s17, 1 }
   0x8   : > { %s617_s21 = scalar_select %p89_p1, %s552_s14, %s91_s19  }
   0x9   : > { %p619_p5 = por %p102_p2, %p101_p0  ;;  %p623_p6 = por %p108_p4, %p107_p3 }
   0xa   : > { %p406_p7 = scmp.ge.s32.totalorder %s556_s15, 1  ;;  %p141_p8 = scmp.lt.s32.totalorder %s556_s15, 3 }
   0xc   : > { %p142_p9 = pnand %p406_p7, %p141_p8 }
   0xd   : > { %s408_s28 = sshll.u32 (!%p142_p9), %s602_s16, 3  ;;  %s162_s6 = sand.u32 (!%p142_p9), 1, %s548_s13  }
   0xe   : > { %145 = sbr.rel (%p142_p9) target bundleno = 240 (0xf0), region = 32  ;;  %p166_p10 = scmp.lt.s32.totalorder (!%p142_p9), %s408_s28, 15 }
   0xf   : > { %s407_s7 = sshll.u32 (!%p142_p9), %s162_s6, 6  ;;  %s424_s11 = sshll.u32 (!%p142_p9), %s602_s16, 10 }
  0x10   : > { %s164_s10 = scalar_lea.vmem (!%p142_p9), [#allocation2], %s407_s7  ;;  %s657_s24 = scalar_lea.hbm (!%p142_p9), %s706_s3, %s424_s11 }
  0x11   : > { %s341_s17 = sshll.u32 (!%p142_p9), %s164_s10, 4  ;;  %s663_s16 = scalar_lea.sflag (!%p142_p9), [#allocation3], %s162_s6  ;;  %s659_s17 = int_to_ptr.vmem [resolvable:$true] %s341_s17 }
  0x12   : > { %s496_s25 = scalar_lea.vmem (!%p142_p9), %s659_s17, 1024  ;;  %s558_s26 = smov (!%p142_p9), [#allocation2]  }
  0x13   : > { %v181_v0 = vld [vmem:[%s704_s1 + $0x8] sm:$0xff]  ;;  %v180_v1 = vld [vmem:[%s704_s1] sm:$0xff]  ;;  %s714_s28 = smov (!%p166_p10, %s408_s28), 15  ;;  %vm189_vm0 = vcmask 130048   ;;  %p497_p11 = scmp.ne.s32.totalorder %s659_s17, %s496_s25 }
  0x14   : > { %435 = vmatprep.subr.mxu0 %v181_v0  ;;  %451 = vmatprep.subr.mxu1 %v181_v0  ;;  %s409_s29 = sshll.u32 %s714_s28, 3  ;;  %v410_v10 = vld [vmem:[%s705_s2] ss:$0 sm:$0xff]  ;;  %s500_s27 = sshll.u32 %s558_s26, 4  ;;  %s501_s27 = int_to_ptr.vmem [resolvable:$false] %s500_s27 }
  0x15   : > { %436 = vmatpush3.msra.mxu0 %v181_v0  ;;  %453 = vmatpush3.msra.mxu1 %v181_v0  ;;  %s169_s5 = scalar_lea.vmem %s703_s0, %s409_s29  ;;  %p498_p12 = pnand %p497_p11, %p619_p5 }
  0x16   : > { %437 = vmatprep.subr.mxu0 %v180_v1  ;;  %452 = vmatprep.subr.mxu1 %v180_v1  ;;  %v172_v2 = vld [vmem:[%s169_s5] sm:$0xff]  ;;  %v173_v4 = vld [vmem:[%s169_s5 + $0x8] sm:$0xff]  ;;  %v174_v6 = vld [vmem:[%s169_s5 + $0x10] sm:$0xff]  ;;  %s502_s28 = scalar_lea.vmem %s501_s27, 2048  ;;  %p503_p0 = scmp.lt.s32.totalorder %s659_s17, %s501_s27 }
  0x17   : > { %438 = vmatpush3.msra.mxu0 %v180_v1  ;;  %454 = vmatpush3.msra.mxu1 %v180_v1  ;;  %v176_v3 = vld [vmem:[%s169_s5 + $0x20] sm:$0xff]  ;;  %v177_v5 = vld [vmem:[%s169_s5 + $0x28] sm:$0xff]  ;;  %v178_v7 = vld [vmem:[%s169_s5 + $0x30] sm:$0xff]  ;;  %p499_p13 = pneg %p498_p12  ;;  %p504_p1 = scmp.lt.s32.totalorder %s502_s28, %s496_s25 }
  0x18   : > { %439 = vmatprep.mubr.msk.f32.mxu0 %vm189_vm0, %v172_v2  ;;  %445 = vmatprep.mubr.msk.f32.mxu1 %vm189_vm0, %v176_v3  ;;  %v175_v8 = vld [vmem:[%s169_s5 + $0x18] sm:$0xff] }
  0x19   : > { %440 = vmatmul.mubr.msk.f32.vlgmr.msra.gmra.mxu0 %vm189_vm0, %v173_v4  ;;  %446 = vmatmul.mubr.msk.f32.vlgmr.msra.gmra.mxu1 %vm189_vm0, %v177_v5  ;;  %v179_v9 = vld [vmem:[%s169_s5 + $0x38] sm:$0xff]  ;;  %p505_p2 = por %p504_p1, %p503_p0 }
  0x1a   : > { %442 = vmatprep.mubr.msk.f32.mxu0 %vm189_vm0, %v174_v6  ;;  %448 = vmatprep.mubr.msk.f32.mxu1 %vm189_vm0, %v178_v7 }
  0x1b   : > { %p506_p3 = pnand %p505_p2, %p499_p13 }
  0x1d   : > { %443 = vmatmul.mubr.msk.f32.gmra.mxu0 %vm189_vm0, %v175_v8  ;;  %449 = vmatmul.mubr.msk.f32.gmra.mxu1 %vm189_vm0, %v179_v9 }
  0xd9   : > { %v441_v11 = vpop.f32.mrf.mxu0  ;;  %v447_v12 = vpop.f32.mrf.mxu1 }
  0xda   : > { %v286_v13 = vadd.f32 %v441_v11, %v410_v10  ;;  %v306_v14 = vadd.f32 %v447_v12, %v410_v10 }
  0xdb   : > { %v280_v15 = vpop.f32.mrf.mxu0  ;;  %v300_v16 = vpop.f32.mrf.mxu1 }
  0xdc   : > { %320 = vst [vmem:[%s164_s10 + $0x8] sm:$0xff] %v286_v13  ;;  %324 = vst [vmem:[%s164_s10 + $0x28] sm:$0xff] %v306_v14  ;;  %v281_v17 = vadd.f32 %v410_v10, %v280_v15  ;;  %v301_v18 = vadd.f32 %v410_v10, %v300_v16 }
  0xdd   : > { %v444_v19 = vpop.f32.mrf.mxu0  ;;  %v450_v20 = vpop.f32.mrf.mxu1 }
  0xde   : > { %319 = vst [vmem:[%s164_s10] sm:$0xff] %v281_v17  ;;  %323 = vst [vmem:[%s164_s10 + $0x20] sm:$0xff] %v301_v18  ;;  %v296_v21 = vadd.f32 %v444_v19, %v410_v10  ;;  %v316_v22 = vadd.f32 %v450_v20, %v410_v10 }
  0xdf   : > { %v290_v23 = vpop.f32.mrf.mxu0  ;;  %v310_v24 = vpop.f32.mrf.mxu1 }
  0xe0   : > { %322 = vst [vmem:[%s164_s10 + $0x18] sm:$0xff] %v296_v21  ;;  %326 = vst [vmem:[%s164_s10 + $0x38] sm:$0xff] %v316_v22  ;;  %v291_v25 = vadd.f32 %v410_v10, %v290_v23  ;;  %v311_v26 = vadd.f32 %v410_v10, %v310_v24 }
  0xe2   : > { %321 = vst [vmem:[%s164_s10 + $0x10] sm:$0xff] %v291_v25  ;;  %325 = vst [vmem:[%s164_s10 + $0x30] sm:$0xff] %v311_v26 }
  0xe3   : > { %509 = shalt.err (!%p506_p3)
}
  0xe4   : > { %s510_s29 = scalar_lea.hbm %s657_s24, 1024  ;;  %s514_s5 = scalar_lea.hbm %s706_s3, 2048 }
  0xe5   : > { %p511_p4 = scmp.ne.s32.totalorder %s657_s24, %s510_s29  ;;  %p515_p9 = scmp.lt.s32.totalorder %s657_s24, %s706_s3 }
  0xe6   : > { %p516_p10 = scmp.lt.s32.totalorder %s514_s5, %s510_s29 }
  0xe7   : > { %p512_p7 = pnand %p511_p4, %p619_p5 }
  0xe8   : > { %p517_p11 = por %p516_p10, %p515_p9 }
  0xe9   : > { %p513_p8 = pneg %p512_p7 }
  0xeb   : > { %p518_p12 = pnand %p517_p11, %p513_p8 }
  0xed   : > { %521 = shalt.err (!%p518_p12)
}
  0xee   : > { %s559_s8 = smov 128   ;;  %s560_s9 = smov 8  }
  0xef   : > { %455 = dma.vmem_to_hbm [thread:$0]  (%p619_p5), %s659_s17, 1024, %s657_s24, %s663_s16, %s559_s8, %s559_s8, %s560_s9  }
  0xf0 PF: > { %p461_p13 = scmp.ge.s32.totalorder %s556_s15, 2  ;;  %s356_s10 = sand.u32 1, %s544_s12  }
  0xf1   : > { %s357_s11 = scalar_lea.sflag [#allocation3], %s356_s10 }
  0xf2   : > { %p458_p0 = pnand %p461_p13, %p623_p6 }
  0xf4   : > { %p459_p1 = pneg %p458_p0 }
  0xf6   : > { %539 = dma.done.wait (%p459_p1), %s357_s11, 1024  }
  0xf7   : > { %541 = vsyncadd (%p459_p1), %s357_s11, 4294966272  ;;  %p13_p2 = scmp.ge.s32.totalorder %s606_s18, 4   ;;  %s709_s12 = smov %s548_s13 }
  0xf8   : > { %s710_s13 = smov %s552_s14  ;;  %s711_s14 = smov %s617_s21 }
  0xf9   : > { %s712_s15 = smov %s606_s18  ;;  %15 = sbr.rel (!%p13_p2) target bundleno = 3 (0x3), region = 67 }
  0xfe   :  { %362 = vsyncpa [#allocation3], 1 }
  0xff   :  { %364 = vsyncpa [#allocation3 + $0x1], 1 }

</bundles_post_ra>
